<compile_context>
chip_gen: v5e
topology: v5e:2x2
jax: 0.10.0
libtpu: 0.0.40
codegen_flags: <defaults>
</compile_context>

<pallas_src>
import functools

import jax
import jax.numpy as jnp
from jax.experimental import pallas as pl
from jax.experimental.pallas import tpu as pltpu


def _channel_attention_kernel(x_ref, w1t_ref, w2t_ref, out_ref, sum_acc, max_acc,
                              *, hw, thw, inv_hw, mask_tail):
    hw_id = pl.program_id(1)
    n_hw = pl.num_programs(1)

    @pl.when(hw_id == 0)
    def _init():
        sum_acc[...] = jnp.zeros_like(sum_acc)
        max_acc[...] = jnp.full_like(max_acc, -jnp.inf)

    x = x_ref[...].astype(jnp.float32)  # (tb, C, thw), upcast per tile (bf16-safe)

    def _accumulate(x_sum, x_max):
        sum_acc[...] = sum_acc[...] + jnp.sum(x_sum, axis=-1)
        max_acc[...] = jnp.maximum(max_acc[...], jnp.max(x_max, axis=-1))

    if mask_tail:
        # Only the LAST HW tile can contain out-of-bounds (padded, undefined) lanes,
        # so all earlier steps accumulate unmasked (no per-step iota/select cost).
        @pl.when(hw_id < n_hw - 1)
        def _full_tile():
            _accumulate(x, x)

        @pl.when(hw_id == n_hw - 1)
        def _tail_tile():
            lane = jax.lax.broadcasted_iota(jnp.int32, (1, 1, thw), 2)
            valid = (hw_id * thw + lane) < hw          # broadcasts over (tb, C, thw)
            _accumulate(jnp.where(valid, x, 0.0), jnp.where(valid, x, -jnp.inf))
    else:
        _accumulate(x, x)

    @pl.when(hw_id == n_hw - 1)
    def _finalize():
        # fc2(fc1(.)) is linear in this "backup" variant (no bias, no ReLU), so
        # fc(avg) + fc(max) == fc(avg + max): one matmul chain instead of two.
        pooled = sum_acc[...] * inv_hw + max_acc[...]                        # (tb, C)
        h = jnp.dot(pooled, w1t_ref[...], preferred_element_type=jnp.float32)  # (tb, Cr)
        o = jnp.dot(h, w2t_ref[...], preferred_element_type=jnp.float32)       # (tb, C)
        out_ref[...] = jax.nn.sigmoid(o).reshape(out_ref.shape).astype(out_ref.dtype)


def _tpu_budgets(block_override=None, vmem_override=None):
    """Generation-aware (x-block byte budget, scoped VMEM limit)."""
    try:
        vmem_cap = int(pltpu.get_tpu_info().vmem_capacity_bytes)
    except Exception:
        vmem_cap = None
    if vmem_cap is not None and vmem_cap > 96 * 1024 * 1024:
        # v5e / v6e class: 128 MiB VMEM -> big blocks, generous scoped limit.
        block, limit = 16 << 20, 80 << 20
    else:
        # v7x class (64 MiB VMEM per TC) or unknown: stay well inside the budget.
        block, limit = 8 << 20, 40 << 20
    if block_override is not None:
        block = int(block_override)
    if vmem_override is not None:
        limit = int(vmem_override)
    return block, limit


def _pick_tb(batch, rows_fit):
    """Largest divisor of `batch` within the row budget; when batch >= 2 also cap at
    batch // 2 so there are >= 2 'parallel' batch tiles (keeps both v7x TCs busy)."""
    if batch <= 1:
        return 1
    cap = max(1, min(rows_fit, batch // 2))
    for t in range(cap, 0, -1):
        if batch % t == 0:
            return t
    return 1


def channel_attention(x_nchw, w1, w2, *, block_budget_bytes=None, vmem_limit_bytes=None):
    """x_nchw: (B, C, H, W); w1: (C//r, C, 1, 1); w2: (C, C//r, 1, 1).
    Returns sigmoid channel-attention weights of shape (B, C, 1, 1)."""
    B, C, H, W = x_nchw.shape
    HW = H * W
    Cr = w1.shape[0]

    x_flat = x_nchw.reshape(B, C, HW)               # native dtype; upcast inside kernel
    # Pre-transpose the 1x1-conv weights once so the kernel never transposes.
    w1t = w1.reshape(Cr, C).T.astype(jnp.float32)   # (C, Cr)
    w2t = w2.reshape(C, Cr).T.astype(jnp.float32)   # (Cr, C)
    # TODO(synk): for very large C (>=1024) keep w1t/w2t in bf16 (or stage them once via
    # manual DMA) to shrink the double-buffered weight footprint under v7x's VMEM budget.

    block_budget, vmem_limit = _tpu_budgets(block_budget_bytes, vmem_limit_bytes)

    itemsize = jnp.dtype(x_flat.dtype).itemsize
    row_bytes = C * HW * itemsize
    min_thw = 128 if itemsize >= 4 else 512         # >=1 KiB DMA segments for bf16/int8

    if row_bytes <= block_budget:
        thw = HW                                    # full contiguous rows, one HW step
        rows_fit = max(1, block_budget // row_bytes)
    else:
        rows_fit = 1
        lanes = block_budget // (C * itemsize)
        thw = max(min_thw, (lanes // 128) * 128)    # 128-multiple lane chunks

    tb = _pick_tb(B, rows_fit)
    n_b = B // tb
    n_hw = pl.cdiv(HW, thw)
    mask_tail = (HW % thw) != 0

    kernel = functools.partial(
        _channel_attention_kernel,
        hw=HW, thw=thw, inv_hw=1.0 / float(HW), mask_tail=mask_tail)

    cost = pl.CostEstimate(
        flops=int(2 * B * C * HW + 4 * B * C * Cr),   # pooling reductions + matmul chain
        transcendentals=int(B * C),                   # sigmoid
        bytes_accessed=int(B * C * HW * itemsize + 2 * C * Cr * 4 + B * C * itemsize),
    )

    out = pl.pallas_call(
        kernel,
        out_shape=jax.ShapeDtypeStruct((B, 1, C), x_nchw.dtype),
        grid_spec=pltpu.PrefetchScalarGridSpec(
            num_scalar_prefetch=0,
            grid=(n_b, n_hw),                         # HW reduction is the LAST grid axis
            in_specs=[
                pl.BlockSpec((tb, C, thw), lambda b, k: (b, 0, k)),
                pl.BlockSpec((C, Cr), lambda b, k: (0, 0)),
                pl.BlockSpec((Cr, C), lambda b, k: (0, 0)),
            ],
            out_specs=pl.BlockSpec((tb, 1, C), lambda b, k: (b, 0, 0)),
            scratch_shapes=[
                pltpu.VMEM((tb, C), jnp.float32),     # running sum
                pltpu.VMEM((tb, C), jnp.float32),     # running max
            ],
        ),
        compiler_params=pltpu.CompilerParams(
            dimension_semantics=("parallel", "arbitrary"),
            vmem_limit_bytes=vmem_limit,
        ),
        cost_estimate=cost,
    )(x_flat, w1t, w2t)

    return out.reshape(B, C, 1, 1)


def reference(x_nchw, w1, w2):
    """Pure-JAX reference mirroring the PyTorch forward."""
    Cr, C = w1.shape[0], w1.shape[1]
    w1_2d = w1.reshape(Cr, C).astype(jnp.float32)
    w2_2d = w2.reshape(C, Cr).astype(jnp.float32)
    xf = x_nchw.astype(jnp.float32)
    avg = jnp.mean(xf, axis=(2, 3))                   # (B, C)
    mx = jnp.max(xf, axis=(2, 3))                     # (B, C)
    avg_o = (avg @ w1_2d.T) @ w2_2d.T
    max_o = (mx @ w1_2d.T) @ w2_2d.T
    out = jax.nn.sigmoid(avg_o + max_o)
    return out.astype(x_nchw.dtype).reshape(x_nchw.shape[0], C, 1, 1)


if __name__ == "__main__":
    key = jax.random.PRNGKey(0)
    B, C, ratio = 2, 16, 8
    Cr = C // ratio
    kx1, k1, k2, kx2 = jax.random.split(key, 4)
    w1 = jax.random.normal(k1, (Cr, C, 1, 1), dtype=jnp.float32) * 0.1
    w2 = jax.random.normal(k2, (C, Cr, 1, 1), dtype=jnp.float32) * 0.1

    # Case 1: multi-step HW reduction with a masked partial tail tile.  A tiny block
    # budget forces HW=240 to be chopped into 128-lane chunks (128 + masked 112).
    H1, W1 = 16, 15
    x1 = jax.random.normal(kx1, (B, C, H1, W1), dtype=jnp.float32)
    out1 = jax.block_until_ready(channel_attention(x1, w1, w2, block_budget_bytes=8192))
    ref1 = reference(x1, w1, w2)
    assert out1.shape == (B, C, 1, 1)
    assert jnp.allclose(out1, ref1, atol=1e-5, rtol=1e-5), "mismatch (multi-step/masked)"

    # Case 2: default path — full-HW contiguous lane tile, single reduction step,
    # batch split into 2 'parallel' tiles (both TCs busy on v7x).
    H2, W2 = 16, 16
    x2 = jax.random.normal(kx2, (B, C, H2, W2), dtype=jnp.float32)
    out2 = jax.block_until_ready(channel_attention(x2, w1, w2))
    ref2 = reference(x2, w1, w2)
    assert out2.shape == (B, C, 1, 1)
    assert jnp.allclose(out2, ref2, atol=1e-5, rtol=1e-5), "mismatch (single-step)"

    print("KERNEL_OK")
</pallas_src>

<mosaic_0001>
module attributes {stable_mosaic.version = 11 : i64} {
  func.func @_channel_attention_kernel(%arg0: i32, %arg1: i32, %arg2: memref<1x16x128xf32, #tpu.memory_space<vmem>>, %arg3: memref<16x2xf32, #tpu.memory_space<vmem>>, %arg4: memref<2x16xf32, #tpu.memory_space<vmem>>, %arg5: memref<1x1x16xf32, #tpu.memory_space<vmem>>, %arg6: memref<1x16xf32, #tpu.memory_space<vmem>>, %arg7: memref<1x16xf32, #tpu.memory_space<vmem>>) attributes {dimension_semantics = [#tpu.dimension_semantics<parallel>, #tpu.dimension_semantics<arbitrary>], iteration_bounds = array<i64: 2, 2>, scalar_prefetch = 0 : i64, scratch_operands = 2 : i64, tpu.core_type = #tpu.core_type<tc>, window_params = [{transform_indices = @transform_0, window_bounds = array<i64: 1, 16, 128>}, {pipeline_mode = #tpu.pipeline_mode<synchronous>, transform_indices = @transform_1, window_bounds = array<i64: 16, 2>}, {pipeline_mode = #tpu.pipeline_mode<synchronous>, transform_indices = @transform_2, window_bounds = array<i64: 2, 16>}, {transform_indices = @transform_3, window_bounds = array<i64: 1, 1, 16>}]} {
    %c0_i32 = arith.constant 0 : i32
    %0 = arith.cmpi eq, %arg1, %c0_i32 : i32
    %1 = arith.extui %0 : i1 to i32
    %c0_i32_0 = arith.constant 0 : i32
    %2 = arith.cmpi ne, %1, %c0_i32_0 : i32
    scf.if %2 {
      %cst = arith.constant 0.000000e+00 : f32
      %13 = vector.broadcast %cst : f32 to vector<1x16xf32>
      %c0_8 = arith.constant 0 : index
      %c0_9 = arith.constant 0 : index
      %14 = vector.load %arg6[%c0_8, %c0_9] : memref<1x16xf32, #tpu.memory_space<vmem>>, vector<1x16xf32>
      tpu.vector_store %arg6[%c0_8, %c0_9], %13 {strides = array<i32>} : memref<1x16xf32, #tpu.memory_space<vmem>>, vector<1x16xf32>,
      %cst_10 = arith.constant 0xFF800000 : f32
      %15 = vector.broadcast %cst_10 : f32 to vector<1x16xf32>
      %c0_11 = arith.constant 0 : index
      %c0_12 = arith.constant 0 : index
      %16 = vector.load %arg7[%c0_11, %c0_12] : memref<1x16xf32, #tpu.memory_space<vmem>>, vector<1x16xf32>
      tpu.vector_store %arg7[%c0_11, %c0_12], %15 {strides = array<i32>} : memref<1x16xf32, #tpu.memory_space<vmem>>, vector<1x16xf32>,
    } else {
    }
    %c0 = arith.constant 0 : index
    %c0_1 = arith.constant 0 : index
    %c0_2 = arith.constant 0 : index
    %3 = vector.load %arg2[%c0, %c0_1, %c0_2] : memref<1x16x128xf32, #tpu.memory_space<vmem>>, vector<1x16x128xf32>
    %c1_i32 = arith.constant 1 : i32
    %4 = arith.cmpi slt, %arg1, %c1_i32 : i32
    %5 = arith.extui %4 : i1 to i32
    %c0_i32_3 = arith.constant 0 : i32
    %6 = arith.cmpi ne, %5, %c0_i32_3 : i32
    scf.if %6 {
      %c0_8 = arith.constant 0 : index
      %c0_9 = arith.constant 0 : index
      %13 = vector.load %arg6[%c0_8, %c0_9] : memref<1x16xf32, #tpu.memory_space<vmem>>, vector<1x16xf32>
      %cst = arith.constant dense<0.000000e+00> : vector<1x16xf32>
      %14 = vector.multi_reduction <add>, %3, %cst [2] : vector<1x16x128xf32> to vector<1x16xf32>
      %15 = arith.addf %13, %14 : vector<1x16xf32>
      %c0_10 = arith.constant 0 : index
      %c0_11 = arith.constant 0 : index
      %16 = vector.load %arg6[%c0_10, %c0_11] : memref<1x16xf32, #tpu.memory_space<vmem>>, vector<1x16xf32>
      tpu.vector_store %arg6[%c0_10, %c0_11], %15 {strides = array<i32>} : memref<1x16xf32, #tpu.memory_space<vmem>>, vector<1x16xf32>,
      %c0_12 = arith.constant 0 : index
      %c0_13 = arith.constant 0 : index
      %17 = vector.load %arg7[%c0_12, %c0_13] : memref<1x16xf32, #tpu.memory_space<vmem>>, vector<1x16xf32>
      %cst_14 = arith.constant dense<0xFF800000> : vector<1x16xf32>
      %18 = vector.multi_reduction <maximumf>, %3, %cst_14 [2] : vector<1x16x128xf32> to vector<1x16xf32>
      %19 = arith.maximumf %17, %18 : vector<1x16xf32>
      %c0_15 = arith.constant 0 : index
      %c0_16 = arith.constant 0 : index
      %20 = vector.load %arg7[%c0_15, %c0_16] : memref<1x16xf32, #tpu.memory_space<vmem>>, vector<1x16xf32>
      tpu.vector_store %arg7[%c0_15, %c0_16], %19 {strides = array<i32>} : memref<1x16xf32, #tpu.memory_space<vmem>>, vector<1x16xf32>,
    } else {
    }
    %c1_i32_4 = arith.constant 1 : i32
    %7 = arith.cmpi eq, %arg1, %c1_i32_4 : i32
    %8 = arith.extui %7 : i1 to i32
    %c0_i32_5 = arith.constant 0 : i32
    %9 = arith.cmpi ne, %8, %c0_i32_5 : i32
    scf.if %9 {
      %13 = tpu.iota {dimensions = array<i32: 2>} : vector<1x1x128xi32>
      %c128_i32 = arith.constant 128 : i32
      %14 = arith.muli %arg1, %c128_i32 : i32
      %15 = vector.broadcast %14 : i32 to vector<1x1x128xi32>
      %16 = arith.addi %15, %13 : vector<1x1x128xi32>
      %c240_i32 = arith.constant 240 : i32
      %17 = vector.broadcast %c240_i32 : i32 to vector<1x1x128xi32>
      %18 = arith.cmpi slt, %16, %17 : vector<1x1x128xi32>
      %cst = arith.constant 0.000000e+00 : f32
      %19 = vector.shape_cast %18 : vector<1x1x128xi1> to vector<1x1x128xi1>
      %20 = vector.broadcast %19 : vector<1x1x128xi1> to vector<1x16x128xi1>
      %21 = vector.broadcast %cst : f32 to vector<1x16x128xf32>
      %22 = arith.select %20, %3, %21 : vector<1x16x128xi1>, vector<1x16x128xf32>
      %cst_8 = arith.constant 0xFF800000 : f32
      %23 = vector.shape_cast %18 : vector<1x1x128xi1> to vector<1x1x128xi1>
      %24 = vector.broadcast %23 : vector<1x1x128xi1> to vector<1x16x128xi1>
      %25 = vector.broadcast %cst_8 : f32 to vector<1x16x128xf32>
      %26 = arith.select %24, %3, %25 : vector<1x16x128xi1>, vector<1x16x128xf32>
      %c0_9 = arith.constant 0 : index
      %c0_10 = arith.constant 0 : index
      %27 = vector.load %arg6[%c0_9, %c0_10] : memref<1x16xf32, #tpu.memory_space<vmem>>, vector<1x16xf32>
      %cst_11 = arith.constant dense<0.000000e+00> : vector<1x16xf32>
      %28 = vector.multi_reduction <add>, %22, %cst_11 [2] : vector<1x16x128xf32> to vector<1x16xf32>
      %29 = arith.addf %27, %28 : vector<1x16xf32>
      %c0_12 = arith.constant 0 : index
      %c0_13 = arith.constant 0 : index
      %30 = vector.load %arg6[%c0_12, %c0_13] : memref<1x16xf32, #tpu.memory_space<vmem>>, vector<1x16xf32>
      tpu.vector_store %arg6[%c0_12, %c0_13], %29 {strides = array<i32>} : memref<1x16xf32, #tpu.memory_space<vmem>>, vector<1x16xf32>,
      %c0_14 = arith.constant 0 : index
      %c0_15 = arith.constant 0 : index
      %31 = vector.load %arg7[%c0_14, %c0_15] : memref<1x16xf32, #tpu.memory_space<vmem>>, vector<1x16xf32>
      %cst_16 = arith.constant dense<0xFF800000> : vector<1x16xf32>
      %32 = vector.multi_reduction <maximumf>, %26, %cst_16 [2] : vector<1x16x128xf32> to vector<1x16xf32>
      %33 = arith.maximumf %31, %32 : vector<1x16xf32>
      %c0_17 = arith.constant 0 : index
      %c0_18 = arith.constant 0 : index
      %34 = vector.load %arg7[%c0_17, %c0_18] : memref<1x16xf32, #tpu.memory_space<vmem>>, vector<1x16xf32>
      tpu.vector_store %arg7[%c0_17, %c0_18], %33 {strides = array<i32>} : memref<1x16xf32, #tpu.memory_space<vmem>>, vector<1x16xf32>,
    } else {
    }
    %c1_i32_6 = arith.constant 1 : i32
    %10 = arith.cmpi eq, %arg1, %c1_i32_6 : i32
    %11 = arith.extui %10 : i1 to i32
    %c0_i32_7 = arith.constant 0 : i32
    %12 = arith.cmpi ne, %11, %c0_i32_7 : i32
    scf.if %12 {
      %c0_8 = arith.constant 0 : index
      %c0_9 = arith.constant 0 : index
      %13 = vector.load %arg6[%c0_8, %c0_9] : memref<1x16xf32, #tpu.memory_space<vmem>>, vector<1x16xf32>
      %cst = arith.constant 0.00416666688 : f32
      %14 = vector.broadcast %cst : f32 to vector<1x16xf32>
      %15 = arith.mulf %13, %14 : vector<1x16xf32>
      %c0_10 = arith.constant 0 : index
      %c0_11 = arith.constant 0 : index
      %16 = vector.load %arg7[%c0_10, %c0_11] : memref<1x16xf32, #tpu.memory_space<vmem>>, vector<1x16xf32>
      %17 = arith.addf %15, %16 : vector<1x16xf32>
      %c0_12 = arith.constant 0 : index
      %c0_13 = arith.constant 0 : index
      %18 = vector.load %arg3[%c0_12, %c0_13] : memref<16x2xf32, #tpu.memory_space<vmem>>, vector<16x2xf32>
      %cst_14 = arith.constant dense<0.000000e+00> : vector<1x2xf32>
      %19 = tpu.matmul %17, %18, %cst_14 {dimension_numbers = #tpu.dot_dimension_numbers<[1], [0], [0], [1], [0, 0, 1, 1], [], []>} : vector<1x16xf32>, vector<16x2xf32>, vector<1x2xf32> -> vector<1x2xf32>
      %c0_15 = arith.constant 0 : index
      %c0_16 = arith.constant 0 : index
      %20 = vector.load %arg4[%c0_15, %c0_16] : memref<2x16xf32, #tpu.memory_space<vmem>>, vector<2x16xf32>
      %cst_17 = arith.constant dense<0.000000e+00> : vector<1x16xf32>
      %21 = tpu.matmul %19, %20, %cst_17 {dimension_numbers = #tpu.dot_dimension_numbers<[1], [0], [0], [1], [0, 0, 1, 1], [], []>} : vector<1x2xf32>, vector<2x16xf32>, vector<1x16xf32> -> vector<1x16xf32>
      %22 = arith.negf %21 : vector<1x16xf32>
      %23 = math.exp %22 : vector<1x16xf32>
      %cst_18 = arith.constant 1.000000e+00 : f32
      %24 = vector.broadcast %cst_18 : f32 to vector<1x16xf32>
      %25 = arith.addf %24, %23 : vector<1x16xf32>
      %26 = arith.divf %24, %25 : vector<1x16xf32>
      %27 = vector.shape_cast %26 : vector<1x16xf32> to vector<1x1x16xf32>
      %c0_19 = arith.constant 0 : index
      %c0_20 = arith.constant 0 : index
      %c0_21 = arith.constant 0 : index
      %28 = vector.load %arg5[%c0_19, %c0_20, %c0_21] : memref<1x1x16xf32, #tpu.memory_space<vmem>>, vector<1x1x16xf32>
      tpu.vector_store %arg5[%c0_19, %c0_20, %c0_21], %27 {strides = array<i32>} : memref<1x1x16xf32, #tpu.memory_space<vmem>>, vector<1x1x16xf32>,
    } else {
    }
    return
  }
  func.func @transform_0(%arg0: i32, %arg1: i32) -> (i32, i32, i32) {
    %c0_i32 = arith.constant 0 : i32
    %c0_i32_0 = arith.constant 0 : i32
    return %arg0, %c0_i32, %arg1 : i32, i32, i32
  }
  func.func @transform_1(%arg0: i32, %arg1: i32) -> (i32, i32) {
    %c0_i32 = arith.constant 0 : i32
    %c0_i32_0 = arith.constant 0 : i32
    %c0_i32_1 = arith.constant 0 : i32
    return %c0_i32, %c0_i32_0 : i32, i32
  }
  func.func @transform_2(%arg0: i32, %arg1: i32) -> (i32, i32) {
    %c0_i32 = arith.constant 0 : i32
    %c0_i32_0 = arith.constant 0 : i32
    %c0_i32_1 = arith.constant 0 : i32
    return %c0_i32, %c0_i32_0 : i32, i32
  }
  func.func @transform_3(%arg0: i32, %arg1: i32) -> (i32, i32, i32) {
    %c0_i32 = arith.constant 0 : i32
    %c0_i32_0 = arith.constant 0 : i32
    %c0_i32_1 = arith.constant 0 : i32
    return %arg0, %c0_i32, %c0_i32_0 : i32, i32, i32
  }
}

</mosaic_0001>

<bundles_post_ra>
// kernel: tpu_custom_call.1
= control target key start
LH: loop header
LB: loop body
LE: loop exit
PB: predicated region body
PF: predicated region fallthrough
CT: control target
= control target key end

     0   :  { %8 = vsyncpa [#allocation5], 0  ;;  %s1182_s0 = inlined_call_operand.hbm [shape: f32[2,16,240], index: 0, kind: input, shape index: {}]   ;;  %s1183_s1 = inlined_call_operand.vmem [shape: f32[16,2], index: 1, kind: input, shape index: {}]   ;;  %s1184_s2 = inlined_call_operand.vmem [shape: f32[2,16], index: 2, kind: input, shape index: {}]   ;;  %s1185_s3 = inlined_call_operand.hbm [shape: f32[2,1,16], index: 3, kind: output, shape index: {}]  }
   0x1   :  { %10 = vsyncpa [#allocation5 + $0x1], 0 }
   0x2   :  { %11 = vsyncpa [#allocation6], 0 }
   0x3   :  { %13 = vsyncpa [#allocation6 + $0x1], 0  ;;  %s972_s12 = smov 0   ;;  %s974_s13 = smov 0  }
   0x4   :  { %s976_s14 = smov 0   ;;  %s978_s15 = smov 0  }
   0x5   :  { %s980_s16 = smov 0   ;;  %s982_s17 = smov 0  }
   0x6   :  { %s984_s18 = smov 0   ;;  %s986_s19 = smov 0  }
   0x7   :  { %s988_s20 = smov 0   ;;  %s990_s21 = smov 0  }
   0x8   :  { %s992_s22 = smov 0  }
   0x9 LB: > { %1190 = sst [smem:[#allocation10_spill]] %s911_s14  ;;  %s653_s23 = sadd.s32 4294967295, %s943_s22   ;;  %s943_s22 = sphi %s992_s22, %s19_s22   ;;  %s939_s21 = sphi %s990_s21, %s1214_s21   ;;  %s935_s20 = sphi %s988_s20, %s1213_s20   ;;  %s931_s19 = sphi %s986_s19, %s1212_s19   ;;  %s927_s18 = sphi %s984_s18, %s1211_s18   ;;  %s923_s17 = sphi %s982_s17, %s1203_s17   ;;  %s919_s16 = sphi %s980_s16, %s1210_s16   ;;  %s915_s15 = sphi %s978_s15, %s1209_s15   ;;  %s911_s14 = sphi %s976_s14, %s1208_s14   ;;  %s907_s13 = sphi %s974_s13, %s1207_s13   ;;  %s903_s12 = sphi %s972_s12, %s1206_s12  }
   0xa   : > { %1191 = sst [smem:[#allocation11_spill]] %s923_s17  ;;  %s654_s24 = sadd.s32 4294967294, %s943_s22  }
   0xb   : > { %s28_s25 = sadd.s32 1, %s935_s20  ;;  %s31_s26 = sadd.s32 1, %s939_s21 }
   0xc   : > { %p29_p0 = scmp.ge.s32.totalorder %s28_s25, 2  ;;  %s40_s27 = sadd.s32 1, %s923_s17 }
   0xd   : > { %p47_p1 = scmp.ne.s32.totalorder %s923_s17, %s919_s16  ;;  %p48_p2 = scmp.eq.s32.totalorder %s943_s22, 0 }
   0xe   : > { %s1216_s25 = smov (%p29_p0, %s28_s25), 0  ;;  %s1218_s26 = smov (!%p29_p0, %s31_s26), %s939_s21 }
   0xf   : > { %1192 = sst [smem:[#allocation12_spill]] %s1216_s25  ;;  %s36_s28 = ssub.s32 %s935_s20, %s1216_s25 }
  0x10   : > { %p1038_p3 = por %p48_p2, %p47_p1  ;;  %p33_p4 = scmp.ge.s32.totalorder %s1218_s26, 2 }
  0x11   : > { %p53_p5 = scmp.ne.s32.totalorder %s919_s16, %s915_s15  ;;  %p54_p6 = scmp.eq.s32.totalorder %s653_s23, 0 }
  0x12   : > { %s108_s30 = sadd.s32 1, %s911_s14  ;;  %s1220_s26 = smov (%p33_p4, %s1218_s26), 0 }
  0x13   : > { %1194 = sst [smem:[#allocation13_spill]] %s1220_s26  ;;  %p1046_p7 = por %p54_p6, %p53_p5 }
  0x14   : > { %p118_p8 = scmp.ne.s32.totalorder %s911_s14, %s907_s13  ;;  %s35_s5 = ssub.s32 %s939_s21, %s1220_s26 }
  0x15   : > { %p119_p9 = scmp.eq.s32.totalorder %s653_s23, 3  ;;  %s37_s6 = sor.u32 %s36_s28, %s35_s5 }
  0x16   : > { %p106_p10 = scmp.eq.s32.totalorder %s35_s5, 0  ;;  %p38_p11 = scmp.eq.s32.totalorder %s37_s6, 0 }
  0x17   : > { %p1054_p12 = por %p119_p9, %p118_p8  ;;  %p124_p13 = scmp.ne.s32.totalorder %s907_s13, %s903_s12 }
  0x18   : > { %s1059_s8 = scalar_select %p106_p10, %s911_s14, %s108_s30  }
  0x19   : > { %s1062_s9 = scalar_select %p38_p11, %s923_s17, %s40_s27  }
  0x1a   : > { %1197 = sst [smem:[#allocation14_spill]] %s1059_s8  ;;  %p125_p0 = scmp.eq.s32.totalorder %s654_s24, 3 }
  0x1b   : > { %1198 = sst [smem:[#allocation15_spill]] %s1062_s9  ;;  %p684_p1 = scmp.lt.s32.totalorder %s943_s22, 4 }
  0x1c   : > { %p1067_p2 = por %p125_p0, %p124_p13  ;;  %s151_s11 = sand.u32 1, %s923_s17  }
  0x1d   : > { %s657_s15 = sshll.u32 %s151_s11, 4  ;;  %s658_s23 = sshll.u32 %s939_s21, 2 }
  0x1e   : > { %s159_s28 = sadd.s32 %s935_s20, %s658_s23  ;;  %s155_s5 = scalar_lea.vmem [#allocation4], %s657_s15 }
  0x1f   : > { %s164_s6 = sshll.u32 %s155_s5, 4  ;;  %s659_s26 = sshll.u32 %s159_s28, 3  ;;  %s165_s6 = int_to_ptr.vmem [resolvable:$true] %s164_s6 }
  0x20   : > { %s161_s25 = scalar_lea.hbm %s1182_s0, %s659_s26  ;;  %p677_p4 = pnand %p684_p1, %p1038_p3 }
  0x21   : > { %s162_s24 = sshll.u32 %s161_s25, 4  ;;  %s152_s9 = scalar_lea.sflag [#allocation5], %s151_s11  ;;  %s163_s24 = int_to_ptr.hbm [resolvable:$true] %s162_s24 }
  0x22   : > { %s945_s8 = smov 256   ;;  %s946_s17 = smov 128  }
  0x23   : > { %s947_s14 = smov 8   ;;  %p660_p5 = scmp.ge.s32.totalorder %s943_s22, 1 }
  0x24   : > { %679 = dma.hbm_to_vmem [thread:$0]  (!%p677_p4), %s163_s24, 256, %s165_s6, %s152_s9, %s945_s8, %s946_s17, %s947_s14  }
  0x25   : > { %p172_p6 = scmp.lt.s32.totalorder %s943_s22, 5 }
  0x27   : > { %p173_p8 = pnand %p660_p5, %p172_p6 }
  0x28   : > { %s178_s15 = sand.u32 (!%p173_p8), 1, %s919_s16  }
  0x29   : > { %176 = sbr.rel (%p173_p8) target bundleno = 981 (0x3d5), region = 32  ;;  %s661_s23 = sshll.u32 (!%p173_p8), %s178_s15, 4 }
  0x2a   : > { %s179_s28 = scalar_lea.sflag (!%p173_p8), [#allocation5], %s178_s15  ;;  %s182_s5 = scalar_lea.vmem (!%p173_p8), [#allocation4], %s661_s23 }
  0x2e   : > { %894 = dma.done.wait (%p1046_p7), %s179_s28, 256  }
  0x2f   : > { %896 = vsyncadd (%p1046_p7), %s179_s28, 4294967040  ;;  %s203_s25 = sand.u32 1, %s907_s13   ;;  %p662_p3 = scmp.ne.s32.totalorder %s927_s18, 0 }
  0x30   : > { %s1089_s14 = scalar_lea.vmem [#allocation7], %s203_s25 }
  0x31   : > { %208 = sbr.rel (%p662_p3) target bundleno = 57 (0x39), region = 40 }
  0x36   : > { %vm209_vm0 = vcmask 122880   ;;  %v948_v0 = vmov 0.0   ;;  %v949_v1 = vmov -inf  }
  0x37   : > { %210 = vst.msk [vmem:[#allocation2] sm:$0x1] %vm209_vm0, %v948_v0 }
  0x38   : > { %211 = vst.msk [vmem:[#allocation3] sm:$0x1] %vm209_vm0, %v949_v1 }
  0x39 PF: > { %v1092_v2 = vld [vmem:[%s182_s5] sm:$0xff]  ;;  %v1094_v3 = vld [vmem:[%s182_s5 + $0x8] sm:$0xff]  ;;  %p663_p7 = scmp.ge.s32.totalorder %s927_s18, 1 }
  0x3b   : > { %217 = sbr.rel (%p663_p7) target bundleno = 363 (0x16b), region = 44 }
  0x40   : > { %219 = vadd.xlane.f32.xlu0 %v1092_v2  ;;  %284 = vmax.xlane.f32.xlu1 %v1092_v2  ;;  %v950_v4 = vmov 0   ;;  %v272_v46 = vlaneseq  ;;  %vm277_vm1 = vcmask 130112   ;;  %v218_v51 = vld [vmem:[#allocation2] sm:$0x1]  ;;  %vm281_vm2 = vcmask 122880  }
  0x41   : > { %781 = vset.pattern.permute.xlu2 %v950_v4  ;;  %782 = vset.pattern.permute.xlu0 %v950_v4  ;;  %v283_v58 = vld [vmem:[#allocation3] sm:$0x1] }
  0x42   : > { %783 = vset.pattern.permute.xlu1 %v950_v4  ;;  %v273_v47 = vand.u32 127, %v272_v46 }
  0x44   : > { %v275_v48 = vadd.s32 4294967288, %v273_v47 }
  0x48   : > { %221 = vadd.xlane.f32.xlu0 %v1094_v3  ;;  %286 = vmax.xlane.f32.xlu1 %v1094_v3 }
  0xb3   : > { %v220_v5 = vpop.xlane.xlu0 %219  ;;  %v285_v24 = vpop.xlane.xlu1 %284 }
  0xb4   : > { %v225_v6 = vperm.slane %v220_v5, 0  ;;  %v226_v7 = vperm.slane %v220_v5, 1  ;;  %v227_v8 = vperm.slane %v220_v5, 2  ;;  %v228_v9 = vperm.slane %v220_v5, 3 }
  0xb5   : > { %v229_v10 = vperm.slane %v220_v5, 4  ;;  %v230_v11 = vperm.slane %v220_v5, 5  ;;  %v231_v12 = vperm.slane %v220_v5, 6  ;;  %v232_v13 = vperm.slane %v220_v5, 7 }
  0xb6   : > { %241 = vst [vmem:[#allocation1] ss:$9 sm:$0xff] %v225_v6  ;;  %v290_v25 = vperm.slane %v285_v24, 0  ;;  %v291_v26 = vperm.slane %v285_v24, 1  ;;  %v292_v27 = vperm.slane %v285_v24, 2  ;;  %v293_v29 = vperm.slane %v285_v24, 3 }
  0xb7   : > { %243 = vst [vmem:[#allocation1 + $0x1] ss:$9 sm:$0xff] %v226_v7  ;;  %v294_v30 = vperm.slane %v285_v24, 4  ;;  %v295_v31 = vperm.slane %v285_v24, 5  ;;  %v296_v32 = vperm.slane %v285_v24, 6  ;;  %v297_v33 = vperm.slane %v285_v24, 7 }
  0xb8   : > { %245 = vst [vmem:[#allocation1 + $0x2] ss:$9 sm:$0xff] %v227_v8 }
  0xb9   : > { %247 = vst [vmem:[#allocation1 + $0x3] ss:$9 sm:$0xff] %v228_v9 }
  0xba   : > { %249 = vst [vmem:[#allocation1 + $0x4] ss:$9 sm:$0xff] %v229_v10 }
  0xbb   : > { %251 = vst [vmem:[#allocation1 + $0x5] ss:$9 sm:$0xff] %v230_v11  ;;  %v222_v14 = vpop.xlane.xlu0 %221  ;;  %v287_v34 = vpop.xlane.xlu1 %286 }
  0xbc   : > { %253 = vst [vmem:[#allocation1 + $0x6] ss:$9 sm:$0xff] %v231_v12  ;;  %v233_v15 = vperm.slane %v222_v14, 0  ;;  %v234_v16 = vperm.slane %v222_v14, 1  ;;  %v235_v17 = vperm.slane %v222_v14, 2  ;;  %v236_v19 = vperm.slane %v222_v14, 3 }
  0xbd   : > { %255 = vst [vmem:[#allocation1 + $0x7] ss:$9 sm:$0xff] %v232_v13  ;;  %v237_v20 = vperm.slane %v222_v14, 4  ;;  %v238_v21 = vperm.slane %v222_v14, 5  ;;  %v239_v22 = vperm.slane %v222_v14, 6  ;;  %v240_v23 = vperm.slane %v222_v14, 7 }
  0xbe   : > { %v298_v35 = vperm.slane %v287_v34, 0  ;;  %v299_v36 = vperm.slane %v287_v34, 1  ;;  %v300_v37 = vperm.slane %v287_v34, 2  ;;  %v301_v38 = vperm.slane %v287_v34, 3 }
  0xbf   : > { %v302_v40 = vperm.slane %v287_v34, 4  ;;  %v303_v41 = vperm.slane %v287_v34, 5  ;;  %v304_v42 = vperm.slane %v287_v34, 6  ;;  %v305_v43 = vperm.slane %v287_v34, 7 }
  0xc4   : > { %v256_v18 = vld [vmem:[#allocation1] sm:$0xff] }
  0xc5   : > { %257 = vst [vmem:[#allocation1] ss:$9 sm:$0xff] %v233_v15  ;;  %267 = vperm.xlu2 %781, %v256_v18  }
  0xc6   : > { %258 = vst [vmem:[#allocation1 + $0x1] ss:$9 sm:$0xff] %v234_v16 }
  0xc7   : > { %259 = vst [vmem:[#allocation1 + $0x2] ss:$9 sm:$0xff] %v235_v17 }
  0xc8   : > { %260 = vst [vmem:[#allocation1 + $0x3] ss:$9 sm:$0xff] %v236_v19 }
  0xc9   : > { %261 = vst [vmem:[#allocation1 + $0x4] ss:$9 sm:$0xff] %v237_v20 }
  0xca   : > { %262 = vst [vmem:[#allocation1 + $0x5] ss:$9 sm:$0xff] %v238_v21 }
  0xcb   : > { %263 = vst [vmem:[#allocation1 + $0x6] ss:$9 sm:$0xff] %v239_v22 }
  0xcc   : > { %264 = vst [vmem:[#allocation1 + $0x7] ss:$9 sm:$0xff] %v240_v23 }
  0xd3   : > { %v265_v28 = vld [vmem:[#allocation1] sm:$0xff] }
  0xd4   : > { %306 = vst [vmem:[#allocation1] ss:$9 sm:$0xff] %v290_v25  ;;  %270 = vperm.xlu2 %781, %v265_v28  }
  0xd5   : > { %308 = vst [vmem:[#allocation1 + $0x1] ss:$9 sm:$0xff] %v291_v26 }
  0xd6   : > { %310 = vst [vmem:[#allocation1 + $0x2] ss:$9 sm:$0xff] %v292_v27 }
  0xd7   : > { %312 = vst [vmem:[#allocation1 + $0x3] ss:$9 sm:$0xff] %v293_v29 }
  0xd8   : > { %314 = vst [vmem:[#allocation1 + $0x4] ss:$9 sm:$0xff] %v294_v30 }
  0xd9   : > { %316 = vst [vmem:[#allocation1 + $0x5] ss:$9 sm:$0xff] %v295_v31 }
  0xda   : > { %318 = vst [vmem:[#allocation1 + $0x6] ss:$9 sm:$0xff] %v296_v32 }
  0xdb   : > { %320 = vst [vmem:[#allocation1 + $0x7] ss:$9 sm:$0xff] %v297_v33 }
  0xe2   : > { %v321_v39 = vld [vmem:[#allocation1] sm:$0xff] }
  0xe3   : > { %332 = vperm.xlu0 %782, %v321_v39   ;;  %322 = vst [vmem:[#allocation1] ss:$9 sm:$0xff] %v298_v35 }
  0xe4   : > { %323 = vst [vmem:[#allocation1 + $0x1] ss:$9 sm:$0xff] %v299_v36 }
  0xe5   : > { %324 = vst [vmem:[#allocation1 + $0x2] ss:$9 sm:$0xff] %v300_v37 }
  0xe6   : > { %325 = vst [vmem:[#allocation1 + $0x3] ss:$9 sm:$0xff] %v301_v38 }
  0xe7   : > { %326 = vst [vmem:[#allocation1 + $0x4] ss:$9 sm:$0xff] %v302_v40 }
  0xe8   : > { %327 = vst [vmem:[#allocation1 + $0x5] ss:$9 sm:$0xff] %v303_v41 }
  0xe9   : > { %328 = vst [vmem:[#allocation1 + $0x6] ss:$9 sm:$0xff] %v304_v42 }
  0xea   : > { %329 = vst [vmem:[#allocation1 + $0x7] ss:$9 sm:$0xff] %v305_v43 }
  0xf1   : > { %v330_v44 = vld [vmem:[#allocation1] sm:$0xff] }
  0xf2   : > { %335 = vperm.xlu1 %783, %v330_v44  }
 0x11f   : > { %v268_v45 = vpop.permute.xlu2 %267 }
 0x120   : > { %v274_v50 = vperm.slane %v268_v45, %v273_v47 }
 0x12e   : > { %v271_v49 = vpop.permute.xlu2 %270 }
 0x12f   : > { %v276_v52 = vperm.slane %v271_v49, %v275_v48 }
 0x131   : > { %v278_v53 = vsel %vm277_vm1, %v276_v52, %v274_v50 }
 0x132   : > { %v280_v54 = vadd.f32 %v278_v53, %v218_v51 }
 0x134   : > { %282 = vst.msk [vmem:[#allocation2] sm:$0x1] %vm281_vm2, %v280_v54 }
 0x155   : > { %v333_v55 = vpop.permute.xlu0 %332 }
 0x156   : > { %v337_v57 = vperm.slane %v333_v55, %v273_v47 }
 0x164   : > { %v336_v56 = vpop.permute.xlu1 %335 }
 0x165   : > { %v338_v59 = vperm.slane %v336_v56, %v275_v48 }
 0x167   : > { %v339_v60 = vsel %vm277_vm1, %v338_v59, %v337_v57 }
 0x168   : > { %v341_v61 = vmax.f32 %v283_v58, %v339_v60 }
 0x16a   : > { %342 = vst.msk [vmem:[#allocation3] sm:$0x1] %vm281_vm2, %v341_v61 }
 0x16b PF: > { %p664_p9 = scmp.ne.s32.totalorder %s927_s18, 1 }
 0x16c   : > { %s665_s17 = sshll.u32 (!%p664_p9), %s927_s18, 7 }
 0x16d   : > { %346 = sbr.rel (%p664_p9) target bundleno = 967 (0x3c7), region = 48 }
 0x172   : > { %v347_v62 = vlaneseq  ;;  %v350_v63 = vstv %s665_s17  ;;  %v951_v8 = vmov 0   ;;  %vm416_vm4 = vcmask 130112   ;;  %v359_v51 = vld [vmem:[#allocation2] sm:$0x1]  ;;  %v486_v56 = vld [vmem:[%s1183_s1] sm:$0xff] }
 0x173   : > { %784 = vset.pattern.permute.xlu2 %v951_v8  ;;  %785 = vset.pattern.permute.xlu0 %v951_v8  ;;  %vm420_vm5 = vcmask 122880   ;;  %v487_v55 = vld [vmem:[%s1183_s1 + $0x8] sm:$0xff]  ;;  %vm488_vm6 = vcmask 130048   ;;  %vm517_vm7 = vcmask 1041408   ;;  %vm513_vm8 = vcmask 15360  }
 0x174   : > { %v1103_v0 = vand.u32 127, %v347_v62  ;;  %786 = vset.pattern.permute.xlu1 %v951_v8  ;;  %506 = vmatpush.msra.mxu0 %v487_v55  ;;  %v422_v60 = vld [vmem:[#allocation3] sm:$0x1] }
 0x176   : > { %v351_v1 = vadd.s32 %v350_v63, %v1103_v0  ;;  %v414_v48 = vadd.s32 4294967288, %v1103_v0  ;;  %507 = vmatpush.msra.mxu0 %v486_v56 }
 0x178   : > { %vm352_vm3 = vcmp.lt.s32.totalorder %v351_v1, 240 }
 0x179   : > { %v355_v4 = vsel %vm352_vm3, %v1092_v2, 0.0  ;;  %v357_v5 = vsel %vm352_vm3, %v1092_v2, -inf  ;;  %v356_v6 = vsel %vm352_vm3, %v1094_v3, 0.0  ;;  %v358_v7 = vsel %vm352_vm3, %v1094_v3, -inf }
 0x17a   : > { %360 = vadd.xlane.f32.xlu0 %v355_v4  ;;  %423 = vmax.xlane.f32.xlu1 %v357_v5 }
 0x182   : > { %362 = vadd.xlane.f32.xlu0 %v356_v6  ;;  %425 = vmax.xlane.f32.xlu1 %v358_v7  ;;  %v512_v7 = vld [vmem:[%s1184_s2] sm:$0x3] }
 0x183   : > { %667 = vmatpush.msk.msra.mxu1 %vm517_vm7, %v512_v7 }
 0x1ed   : > { %v361_v9 = vpop.xlane.xlu0 %360  ;;  %v424_v26 = vpop.xlane.xlu1 %423 }
 0x1ee   : > { %v366_v10 = vperm.slane %v361_v9, 0  ;;  %v367_v11 = vperm.slane %v361_v9, 1  ;;  %v368_v12 = vperm.slane %v361_v9, 2  ;;  %v369_v13 = vperm.slane %v361_v9, 3 }
 0x1ef   : > { %v370_v14 = vperm.slane %v361_v9, 4  ;;  %v371_v2 = vperm.slane %v361_v9, 5  ;;  %v372_v15 = vperm.slane %v361_v9, 6  ;;  %v373_v16 = vperm.slane %v361_v9, 7 }
 0x1f0   : > { %382 = vst [vmem:[#allocation1] ss:$9 sm:$0xff] %v366_v10  ;;  %v429_v27 = vperm.slane %v424_v26, 0  ;;  %v430_v28 = vperm.slane %v424_v26, 1  ;;  %v431_v29 = vperm.slane %v424_v26, 2  ;;  %v432_v31 = vperm.slane %v424_v26, 3 }
 0x1f1   : > { %384 = vst [vmem:[#allocation1 + $0x1] ss:$9 sm:$0xff] %v367_v11  ;;  %v433_v32 = vperm.slane %v424_v26, 4  ;;  %v434_v33 = vperm.slane %v424_v26, 5  ;;  %v435_v34 = vperm.slane %v424_v26, 6  ;;  %v436_v35 = vperm.slane %v424_v26, 7 }
 0x1f2   : > { %386 = vst [vmem:[#allocation1 + $0x2] ss:$9 sm:$0xff] %v368_v12 }
 0x1f3   : > { %388 = vst [vmem:[#allocation1 + $0x3] ss:$9 sm:$0xff] %v369_v13 }
 0x1f4   : > { %390 = vst [vmem:[#allocation1 + $0x4] ss:$9 sm:$0xff] %v370_v14 }
 0x1f5   : > { %392 = vst [vmem:[#allocation1 + $0x5] ss:$9 sm:$0xff] %v371_v2  ;;  %v363_v3 = vpop.xlane.xlu0 %362  ;;  %v426_v36 = vpop.xlane.xlu1 %425 }
 0x1f6   : > { %394 = vst [vmem:[#allocation1 + $0x6] ss:$9 sm:$0xff] %v372_v15  ;;  %v374_v17 = vperm.slane %v363_v3, 0  ;;  %v375_v18 = vperm.slane %v363_v3, 1  ;;  %v376_v19 = vperm.slane %v363_v3, 2  ;;  %v377_v21 = vperm.slane %v363_v3, 3 }
 0x1f7   : > { %396 = vst [vmem:[#allocation1 + $0x7] ss:$9 sm:$0xff] %v373_v16  ;;  %v378_v22 = vperm.slane %v363_v3, 4  ;;  %v379_v23 = vperm.slane %v363_v3, 5  ;;  %v380_v24 = vperm.slane %v363_v3, 6  ;;  %v381_v25 = vperm.slane %v363_v3, 7 }
 0x1f8   : > { %v437_v37 = vperm.slane %v426_v36, 0  ;;  %v438_v38 = vperm.slane %v426_v36, 1  ;;  %v439_v39 = vperm.slane %v426_v36, 2  ;;  %v440_v40 = vperm.slane %v426_v36, 3 }
 0x1f9   : > { %v441_v42 = vperm.slane %v426_v36, 4  ;;  %v442_v43 = vperm.slane %v426_v36, 5  ;;  %v443_v44 = vperm.slane %v426_v36, 6  ;;  %v444_v45 = vperm.slane %v426_v36, 7 }
 0x1fe   : > { %v397_v20 = vld [vmem:[#allocation1] sm:$0xff] }
 0x1ff   : > { %398 = vst [vmem:[#allocation1] ss:$9 sm:$0xff] %v374_v17  ;;  %408 = vperm.xlu2 %784, %v397_v20  }
 0x200   : > { %399 = vst [vmem:[#allocation1 + $0x1] ss:$9 sm:$0xff] %v375_v18 }
 0x201   : > { %400 = vst [vmem:[#allocation1 + $0x2] ss:$9 sm:$0xff] %v376_v19 }
 0x202   : > { %401 = vst [vmem:[#allocation1 + $0x3] ss:$9 sm:$0xff] %v377_v21 }
 0x203   : > { %402 = vst [vmem:[#allocation1 + $0x4] ss:$9 sm:$0xff] %v378_v22 }
 0x204   : > { %403 = vst [vmem:[#allocation1 + $0x5] ss:$9 sm:$0xff] %v379_v23 }
 0x205   : > { %404 = vst [vmem:[#allocation1 + $0x6] ss:$9 sm:$0xff] %v380_v24 }
 0x206   : > { %405 = vst [vmem:[#allocation1 + $0x7] ss:$9 sm:$0xff] %v381_v25 }
 0x20d   : > { %v406_v30 = vld [vmem:[#allocation1] sm:$0xff] }
 0x20e   : > { %445 = vst [vmem:[#allocation1] ss:$9 sm:$0xff] %v429_v27  ;;  %411 = vperm.xlu2 %784, %v406_v30  }
 0x20f   : > { %447 = vst [vmem:[#allocation1 + $0x1] ss:$9 sm:$0xff] %v430_v28 }
 0x210   : > { %449 = vst [vmem:[#allocation1 + $0x2] ss:$9 sm:$0xff] %v431_v29 }
 0x211   : > { %451 = vst [vmem:[#allocation1 + $0x3] ss:$9 sm:$0xff] %v432_v31 }
 0x212   : > { %453 = vst [vmem:[#allocation1 + $0x4] ss:$9 sm:$0xff] %v433_v32 }
 0x213   : > { %455 = vst [vmem:[#allocation1 + $0x5] ss:$9 sm:$0xff] %v434_v33 }
 0x214   : > { %457 = vst [vmem:[#allocation1 + $0x6] ss:$9 sm:$0xff] %v435_v34 }
 0x215   : > { %459 = vst [vmem:[#allocation1 + $0x7] ss:$9 sm:$0xff] %v436_v35 }
 0x21c   : > { %v460_v41 = vld [vmem:[#allocation1] sm:$0xff] }
 0x21d   : > { %471 = vperm.xlu0 %785, %v460_v41   ;;  %461 = vst [vmem:[#allocation1] ss:$9 sm:$0xff] %v437_v37 }
 0x21e   : > { %462 = vst [vmem:[#allocation1 + $0x1] ss:$9 sm:$0xff] %v438_v38 }
 0x21f   : > { %463 = vst [vmem:[#allocation1 + $0x2] ss:$9 sm:$0xff] %v439_v39 }
 0x220   : > { %464 = vst [vmem:[#allocation1 + $0x3] ss:$9 sm:$0xff] %v440_v40 }
 0x221   : > { %465 = vst [vmem:[#allocation1 + $0x4] ss:$9 sm:$0xff] %v441_v42 }
 0x222   : > { %466 = vst [vmem:[#allocation1 + $0x5] ss:$9 sm:$0xff] %v442_v43 }
 0x223   : > { %467 = vst [vmem:[#allocation1 + $0x6] ss:$9 sm:$0xff] %v443_v44 }
 0x224   : > { %468 = vst [vmem:[#allocation1 + $0x7] ss:$9 sm:$0xff] %v444_v45 }
 0x22b   : > { %v469_v46 = vld [vmem:[#allocation1] sm:$0xff] }
 0x22c   : > { %474 = vperm.xlu1 %786, %v469_v46  }
 0x259   : > { %v409_v47 = vpop.permute.xlu2 %408 }
 0x25a   : > { %v413_v50 = vperm.slane %v409_v47, %v1103_v0 }
 0x268   : > { %v412_v49 = vpop.permute.xlu2 %411 }
 0x269   : > { %v415_v52 = vperm.slane %v412_v49, %v414_v48 }
 0x26b   : > { %v417_v53 = vsel %vm416_vm4, %v415_v52, %v413_v50 }
 0x26c   : > { %v419_v54 = vadd.f32 %v417_v53, %v359_v51 }
 0x26e   : > { %421 = vst.msk [vmem:[#allocation2] sm:$0x1] %vm420_vm5, %v419_v54 }
 0x275   : > { %v482_v1 = vld [vmem:[#allocation2] sm:$0x1] }
 0x276   : > { %v483_v4 = vmul.f32 0.004166667, %v482_v1 }
 0x28f   : > { %v472_v57 = vpop.permute.xlu0 %471 }
 0x290   : > { %v476_v59 = vperm.slane %v472_v57, %v1103_v0 }
 0x29e   : > { %v475_v58 = vpop.permute.xlu1 %474 }
 0x29f   : > { %v477_v61 = vperm.slane %v475_v58, %v414_v48 }
 0x2a1   : > { %v478_v62 = vsel %vm416_vm4, %v477_v61, %v476_v59 }
 0x2a2   : > { %v480_v63 = vmax.f32 %v422_v60, %v478_v62 }
 0x2a4   : > { %481 = vst.msk [vmem:[#allocation3] sm:$0x1] %vm420_vm5, %v480_v63 }
 0x2ab   : > { %v484_v5 = vld [vmem:[#allocation3] sm:$0x1] }
 0x2ac   : > { %v485_v6 = vadd.f32 %v484_v5, %v483_v4 }
 0x2ae   : > { %666 = vmatmul.msk.f32.vlgmr.msra.gmra.mxu0 %vm488_vm6, %v485_v6 }
 0x32b   : > { %v509_v0 = vpop.f32.mrf.mxu0 }
 0x32c   : > { %668 = vmatmul.msk.f32.vlgmr.msra.gmra.mxu1 %vm513_vm8, %v509_v0 }
 0x3a9   : > { %v538_v8 = vpop.f32.mrf.mxu1 }
 0x3aa   : > { %v669_v9 = vmul.f32 -1.442695, %v538_v8 }
 0x3ac   : > { %787 = vpow2.f32 %v669_v9 }
 0x3b2   : > { %v788_v10 = vpop.eup %787 }
 0x3b3   : > { %v544_v11 = vadd.f32 1.0, %v788_v10 }
 0x3b5   : > { %789 = vrcp.f32 %v544_v11  ;;  %v556_v2 = vand.u32 2147483648, %v544_v11  ;;  %v554_v16 = vand.u32 2147483647, %v544_v11  ;;  %vm550_vm10 = vweird.f32 %v544_v11 }
 0x3b7   : > { %v557_v17 = vor.u32 1.1754944e-38, %v556_v2  ;;  %vm555_vm12 = vcmp.eq.f32.partialorder %v554_v16, 8.507059e+37 }
 0x3bb   : > { %v790_v12 = vpop.eup %789 }
 0x3bc   : > { %v546_v13 = vmul.f32 %v790_v12, %v544_v11  ;;  %vm551_vm9 = vweird.f32 %v790_v12 }
 0x3bd   : > { %vm552_vm11 = vmor %vm550_vm10, %vm551_vm9 }
 0x3be   : > { %v547_v14 = vsub.f32 1.0, %v546_v13 }
 0x3c0   : > { %v548_v15 = vmul.f32 %v790_v12, %v547_v14 }
 0x3c2   : > { %v549_v3 = vadd.f32 %v790_v12, %v548_v15 }
 0x3c4   : > { %v553_v18 = vsel %vm552_vm11, %v790_v12, %v549_v3 }
 0x3c5   : > { %v558_v19 = vsel %vm555_vm12, %v557_v17, %v553_v18 }
 0x3c6   : > { %560 = vst.msk [vmem:[%s1089_s14] sm:$0x1] %vm420_vm5, %v558_v19 }
 0x3c7 PF: > { %s570_s30 = scalar_lea.hbm %s1185_s3, %s931_s19  ;;  %s572_s27 = sshll.u32 %s1089_s14, 4  ;;  %s573_s27 = int_to_ptr.vmem [resolvable:$true] %s572_s27 }
 0x3c8   : > { %s574_s24 = sshll.u32 %s570_s30, 4  ;;  %s562_s15 = scalar_lea.sflag [#allocation6], %s203_s25  ;;  %s575_s24 = int_to_ptr.hbm [resolvable:$true] %s574_s24 }
 0x3c9   : > { %s835_s23 = sshra.s32 %s575_s24, 4  ;;  %s841_s18 = scalar_lea.hbm %s1185_s3, 2  ;;  %s836_s23 = int_to_ptr.hbm [resolvable:$true] %s835_s23 }
 0x3ca   : > { %s837_s28 = scalar_lea.hbm %s836_s23, 1  ;;  %p842_p0 = scmp.lt.s32.totalorder %s836_s23, %s1185_s3 }
 0x3cb   : > { %p838_p10 = scmp.ne.s32.totalorder %s836_s23, %s837_s28  ;;  %p843_p1 = scmp.lt.s32.totalorder %s841_s18, %s837_s28 }
 0x3cd   : > { %p839_p11 = pnand %p838_p10, %p1054_p12  ;;  %p844_p4 = por %p843_p1, %p842_p0 }
 0x3cf   : > { %p840_p13 = pneg %p839_p11 }
 0x3d1   : > { %p845_p5 = pnand %p844_p4, %p840_p13 }
 0x3d3   : > { %848 = shalt.err (!%p845_p5)
}
 0x3d4   : > { %674 = dma.vmem_to_hbm [thread:$0]  (%p1054_p12), %s573_s27, 16, %s575_s24, %s562_s15  }
 0x3d5 PF: > { %p685_p6 = scmp.ge.s32.totalorder %s943_s22, 2  ;;  %s586_s19 = sand.u32 1, %s903_s12  }
 0x3d6   : > { %s587_s25 = scalar_lea.sflag [#allocation6], %s586_s19 }
 0x3d7   : > { %p681_p8 = pnand %p685_p6, %p1067_p2 }
 0x3d9   : > { %p682_p3 = pneg %p681_p8 }
 0x3db   : > { %898 = dma.done.wait (%p682_p3), %s587_s25, 16  }
 0x3dc   : > { %900 = vsyncadd (%p682_p3), %s587_s25, 4294967280  ;;  %s19_s22 = sadd.s32 1, %s943_s22   ;;  %s1200_s14 = sld [smem:[#allocation10_spill]] }
 0x3dd   : > { %p16_p7 = scmp.ge.s32.totalorder %s19_s22, 6   ;;  %s1201_s4 = sld [smem:[#allocation14_spill]] }
 0x3de   : > { %s1202_s7 = sld [smem:[#allocation11_spill]]  ;;  %s1206_s12 = smov %s907_s13 }
 0x3df   : > { %s1203_s17 = sld [smem:[#allocation15_spill]]  ;;  %s1209_s15 = smov %s919_s16 }
 0x3e0   : > { %s1204_s8 = sld [smem:[#allocation12_spill]]  ;;  %s1211_s18 = smov %s935_s20 }
 0x3e1   : > { %s1205_s9 = sld [smem:[#allocation13_spill]]  ;;  %s1212_s19 = smov %s939_s21 }
 0x3e2   : > { %s1207_s13 = smov %s1200_s14 }
 0x3e3   : > { %s1208_s14 = smov %s1201_s4  ;;  %18 = sbr.rel (!%p16_p7) target bundleno = 9 (0x9), region = 117 }
 0x3e4   : > { %s1210_s16 = smov %s1202_s7 }
 0x3e6   : > { %s1213_s20 = smov %s1204_s8 }
 0x3e7   : > { %s1214_s21 = smov %s1205_s9 }
 0x3e8   :  { %592 = vsyncpa [#allocation5], 1 }
 0x3e9   :  { %594 = vsyncpa [#allocation5 + $0x1], 1 }
 0x3ea   :  { %595 = vsyncpa [#allocation6], 1 }
 0x3eb   :  { %597 = vsyncpa [#allocation6 + $0x1], 1 }

</bundles_post_ra>
